<compile_context>
chip_gen: v7x
topology: tpu7x:2x2x1
jax: 0.10.0
libtpu: 0.0.40
codegen_flags: <defaults>
</compile_context>

<pallas_src>
import functools
import jax
import jax.numpy as jnp
from jax import lax
from jax.experimental import pallas as pl
from jax.experimental.pallas import tpu as pltpu


def convblock_kernel(x_ref, w1_ref, s1_ref, b1_ref,
                     w2_ref, s2_ref, b2_ref,
                     wr_ref, br_ref, o_ref, *, H, W):
    """Processes one block of BB images.

    x_ref:  (BB, Cin, H*W)   channels on sublanes, flattened spatial on lanes
    w1_ref: (Cout, 9*Cin)    conv1 3x3 weights, taps concatenated along K
    s1_ref, b1_ref: (Cout,1) folded BN1 scale / bias (conv bias absorbed)
    w2_ref: (Cout, 9*Cout)   conv2 3x3 weights, taps concatenated along K
    s2_ref, b2_ref: (Cout,1) folded BN2 scale / bias
    wr_ref: (Cout, Cin)      residual 1x1 conv weight
    br_ref: (Cout,1)         residual bias
    o_ref:  (BB, Cout, H*W)
    """
    BB = x_ref.shape[0]
    HW = H * W
    # lane-aligned flat pad width (>= W+1) so the pad concat has aligned operands
    padw = -(-(W + 1) // 128) * 128

    # Column index of every lane (position inside an image row).  Only the dx=+-1
    # taps that cross a row edge need masking; dy (row) padding is handled by the
    # flat zero-pad in shift_taps, so no pad-scratch buffer exists at all.
    lane = lax.broadcasted_iota(jnp.int32, (1, HW), 1)
    col = (lane & (W - 1)) if (W & (W - 1)) == 0 else (lane % W)
    ok_l = col >= 1          # source column x-1 is inside the image
    ok_r = col <= W - 2      # source column x+1 is inside the image

    def shift_taps(a):
        """a: (R, HW). Returns (9*R, HW): for every 3x3 tap (dy, dx) the map
        p -> a[:, p + dy*W + dx], zero where the tap leaves the image.  Built from
        contiguous lane slices of one flat zero-padded copy (shift work stays on
        the XLU; nothing strided is materialized)."""
        R = a.shape[0]
        zpad = jnp.zeros((R, padw), a.dtype)
        aw = jnp.concatenate([zpad, a, zpad], axis=1)      # (R, HW + 2*padw)
        pieces = []
        for dy in (-1, 0, 1):
            for dx in (-1, 0, 1):
                off = padw + dy * W + dx                   # static offset
                s = aw[:, off:off + HW]
                if dx == -1:
                    s = jnp.where(ok_l, s, 0.0)
                elif dx == 1:
                    s = jnp.where(ok_r, s, 0.0)
                pieces.append(s)
        return jnp.concatenate(pieces, axis=0)             # (9*R, HW)

    def lrelu(v):
        return jnp.where(v > 0, v, 0.2 * v)

    # hoist all small loads out of the per-image loop
    w1 = w1_ref[...]
    w2 = w2_ref[...]
    wr = wr_ref[...]
    s1, b1 = s1_ref[...], b1_ref[...]
    s2, b2 = s2_ref[...], b2_ref[...]
    br = br_ref[...]

    for i in range(BB):                                    # static unroll over the block
        xb = x_ref[i]                                      # (Cin, HW)
        # conv1 + BN1 + LeakyReLU : single (Cout,9Cin) @ (9Cin,HW) MXU matmul
        h = jnp.dot(w1, shift_taps(xb), preferred_element_type=jnp.float32)
        h = lrelu(h * s1 + b1)                             # (Cout, HW)
        # conv2 + BN2 + LeakyReLU : single (Cout,9Cout) @ (9Cout,HW) MXU matmul
        h2 = jnp.dot(w2, shift_taps(h), preferred_element_type=jnp.float32)
        h2 = lrelu(h2 * s2 + b2)
        # residual 1x1 conv
        res = jnp.dot(wr, xb, preferred_element_type=jnp.float32) + br
        o_ref[i] = (h2 + res).astype(o_ref.dtype)          # lane-dense (Cout, HW) store


@jax.jit
def convblock_pallas(x_nchw, params):
    """x_nchw: (B, Cin, H, W) float32. Returns (B, Cout, H, W)."""
    w1m, s1, b1, w2m, s2, b2, wrm, br = params
    B, Cin, H, W = x_nchw.shape
    Cout = w1m.shape[0]
    HW = H * W

    # NCHW -> (B, Cin, H*W): a free row-major reshape (no transpose, no pad, no
    # extra HBM round trips outside the kernel).
    x = x_nchw.reshape(B, Cin, HW)

    # <= 2 batch blocks on a "parallel" grid axis: v7x's two TensorCores split the
    # work; all images of a block run in one grid step (amortized step overhead).
    nblk = 2 if (B >= 2 and B % 2 == 0) else 1
    bb = B // nblk

    kernel = functools.partial(convblock_kernel, H=H, W=W)

    out = pl.pallas_call(
        kernel,
        out_shape=jax.ShapeDtypeStruct((B, Cout, HW), jnp.float32),
        grid_spec=pltpu.PrefetchScalarGridSpec(
            num_scalar_prefetch=0,
            grid=(nblk,),
            in_specs=[
                pl.BlockSpec((bb, Cin, HW), lambda i: (i, 0, 0)),
                pl.BlockSpec((Cout, 9 * Cin), lambda i: (0, 0)),
                pl.BlockSpec((Cout, 1), lambda i: (0, 0)),
                pl.BlockSpec((Cout, 1), lambda i: (0, 0)),
                pl.BlockSpec((Cout, 9 * Cout), lambda i: (0, 0)),
                pl.BlockSpec((Cout, 1), lambda i: (0, 0)),
                pl.BlockSpec((Cout, 1), lambda i: (0, 0)),
                pl.BlockSpec((Cout, Cin), lambda i: (0, 0)),
                pl.BlockSpec((Cout, 1), lambda i: (0, 0)),
            ],
            out_specs=pl.BlockSpec((bb, Cout, HW), lambda i: (i, 0, 0)),
        ),
        compiler_params=pltpu.CompilerParams(
            dimension_semantics=("parallel",)),
    )(x, w1m, s1, b1, w2m, s2, b2, wrm, br)

    return out.reshape(B, Cout, H, W)   # free reshape back to NCHW


def init_params(key, cin, cout):
    """Deterministic synthetic parameters (PyTorch-like shapes, eval-mode BN)."""
    ks = jax.random.split(key, 12)
    eps = 1e-5

    def conv_w(k, co, ci, kh, kw):
        fan_in = ci * kh * kw
        bound = 1.0 / jnp.sqrt(fan_in)
        return jax.random.uniform(k, (co, ci, kh, kw), jnp.float32, -bound, bound)

    def conv_b(k, co, fan_in):
        bound = 1.0 / jnp.sqrt(fan_in)
        return jax.random.uniform(k, (co,), jnp.float32, -bound, bound)

    # conv1 + BN1
    w1_t = conv_w(ks[0], cout, cin, 3, 3)            # (Cout,Cin,3,3)
    cb1 = conv_b(ks[1], cout, cin * 9)
    g1 = 1.0 + 0.1 * jax.random.normal(ks[2], (cout,))
    be1 = 0.1 * jax.random.normal(ks[3], (cout,))
    m1 = 0.1 * jax.random.normal(ks[4], (cout,))
    v1 = jnp.abs(1.0 + 0.1 * jax.random.normal(ks[5], (cout,)))
    s1 = g1 / jnp.sqrt(v1 + eps)
    b1 = (cb1 - m1) * s1 + be1

    # conv2 + BN2
    w2_t = conv_w(ks[6], cout, cout, 3, 3)
    cb2 = conv_b(ks[7], cout, cout * 9)
    g2 = 1.0 + 0.1 * jax.random.normal(ks[8], (cout,))
    be2 = 0.1 * jax.random.normal(ks[9], (cout,))
    m2 = 0.1 * jax.random.normal(ks[10], (cout,))
    v2 = jnp.abs(1.0 + 0.1 * jax.random.normal(ks[11], (cout,)))
    s2 = g2 / jnp.sqrt(v2 + eps)
    b2 = (cb2 - m2) * s2 + be2

    # residual 1x1 conv (in_channels != out_channels in this example)
    kr1, kr2 = jax.random.split(jax.random.fold_in(key, 99))
    wr_t = conv_w(kr1, cout, cin, 1, 1)               # (Cout,Cin,1,1)
    br = conv_b(kr2, cout, cin)

    # repack for the kernel: (Cout,Cin,3,3) -> (Cout,3,3,Cin) -> (Cout, 9*Cin),
    # taps K-concatenated in (dy,dx) row-major order to match shift_taps.
    w1 = jnp.transpose(w1_t, (0, 2, 3, 1)).reshape(cout, 9 * cin)
    w2 = jnp.transpose(w2_t, (0, 2, 3, 1)).reshape(cout, 9 * cout)
    wr = wr_t[:, :, 0, 0]                             # (Cout, Cin)

    params = (w1, s1.reshape(cout, 1), b1.reshape(cout, 1),
              w2, s2.reshape(cout, 1), b2.reshape(cout, 1),
              wr, br.reshape(cout, 1))
    raw = (w1_t, cb1, g1, be1, m1, v1, w2_t, cb2, g2, be2, m2, v2, wr_t, br, eps)
    return params, raw


def reference_jax(x_nchw, raw):
    """Pure-JAX reference mirroring the PyTorch forward (eval-mode BN)."""
    (w1_t, cb1, g1, be1, m1, v1, w2_t, cb2, g2, be2, m2, v2, wr_t, br, eps) = raw
    dn = ("NCHW", "OIHW", "NCHW")

    def conv(x, w, b, pad):
        y = lax.conv_general_dilated(x, w, (1, 1), ((pad, pad), (pad, pad)),
                                     dimension_numbers=dn)
        return y + b[None, :, None, None]

    def bn(x, g, be, m, v):
        return (x - m[None, :, None, None]) / jnp.sqrt(v + eps)[None, :, None, None] \
               * g[None, :, None, None] + be[None, :, None, None]

    def lrelu(x):
        return jnp.where(x > 0, x, 0.2 * x)

    h = lrelu(bn(conv(x_nchw, w1_t, cb1, 1), g1, be1, m1, v1))
    h = lrelu(bn(conv(h, w2_t, cb2, 1), g2, be2, m2, v2))
    res = conv(x_nchw, wr_t, br, 0)
    return h + res


if __name__ == "__main__":
    B, Cin, Cout, H, W = 2, 4, 8, 16, 16
    key = jax.random.PRNGKey(0)
    kx, kp = jax.random.split(key)
    x = jax.random.normal(kx, (B, Cin, H, W), jnp.float32)

    params, raw = init_params(kp, Cin, Cout)

    out = convblock_pallas(x, params)
    out = jax.block_until_ready(out)

    ref = reference_jax(x, raw)
    assert out.shape == (B, Cout, H, W)
    err = jnp.max(jnp.abs(out - ref))
    assert jnp.allclose(out, ref, atol=1e-4, rtol=1e-4), f"max err {err}"

    print("KERNEL_OK")
</pallas_src>

<mosaic_0001>
module attributes {stable_mosaic.version = 11 : i64} {
  func.func @convblock_kernel(%arg0: i32, %arg1: memref<1x4x256xf32, #tpu.memory_space<vmem>>, %arg2: memref<8x36xf32, #tpu.memory_space<vmem>>, %arg3: memref<8x1xf32, #tpu.memory_space<vmem>>, %arg4: memref<8x1xf32, #tpu.memory_space<vmem>>, %arg5: memref<8x72xf32, #tpu.memory_space<vmem>>, %arg6: memref<8x1xf32, #tpu.memory_space<vmem>>, %arg7: memref<8x1xf32, #tpu.memory_space<vmem>>, %arg8: memref<8x4xf32, #tpu.memory_space<vmem>>, %arg9: memref<8x1xf32, #tpu.memory_space<vmem>>, %arg10: memref<1x8x256xf32, #tpu.memory_space<vmem>>) attributes {dimension_semantics = [#tpu.dimension_semantics<parallel>], iteration_bounds = array<i64: 2>, scalar_prefetch = 0 : i64, scratch_operands = 0 : i64, tpu.core_type = #tpu.core_type<tc>, window_params = [{transform_indices = @transform_0, window_bounds = array<i64: 1, 4, 256>}, {pipeline_mode = #tpu.pipeline_mode<synchronous>, transform_indices = @transform_1, window_bounds = array<i64: 8, 36>}, {pipeline_mode = #tpu.pipeline_mode<synchronous>, transform_indices = @transform_2, window_bounds = array<i64: 8, 1>}, {pipeline_mode = #tpu.pipeline_mode<synchronous>, transform_indices = @transform_3, window_bounds = array<i64: 8, 1>}, {pipeline_mode = #tpu.pipeline_mode<synchronous>, transform_indices = @transform_4, window_bounds = array<i64: 8, 72>}, {pipeline_mode = #tpu.pipeline_mode<synchronous>, transform_indices = @transform_5, window_bounds = array<i64: 8, 1>}, {pipeline_mode = #tpu.pipeline_mode<synchronous>, transform_indices = @transform_6, window_bounds = array<i64: 8, 1>}, {pipeline_mode = #tpu.pipeline_mode<synchronous>, transform_indices = @transform_7, window_bounds = array<i64: 8, 4>}, {pipeline_mode = #tpu.pipeline_mode<synchronous>, transform_indices = @transform_8, window_bounds = array<i64: 8, 1>}, {transform_indices = @transform_9, window_bounds = array<i64: 1, 8, 256>}]} {
    %0 = tpu.iota {dimensions = array<i32: 1>} : vector<1x256xi32>
    %c15_i32 = arith.constant 15 : i32
    %1 = vector.broadcast %c15_i32 : i32 to vector<1x256xi32>
    %2 = arith.andi %0, %1 : vector<1x256xi32>
    %c1_i32 = arith.constant 1 : i32
    %3 = vector.broadcast %c1_i32 : i32 to vector<1x256xi32>
    %4 = arith.cmpi sge, %2, %3 : vector<1x256xi32>
    %c14_i32 = arith.constant 14 : i32
    %5 = vector.broadcast %c14_i32 : i32 to vector<1x256xi32>
    %6 = arith.cmpi sle, %2, %5 : vector<1x256xi32>
    %c0 = arith.constant 0 : index
    %c0_0 = arith.constant 0 : index
    %7 = vector.load %arg2[%c0, %c0_0] : memref<8x36xf32, #tpu.memory_space<vmem>>, vector<8x36xf32>
    %c0_1 = arith.constant 0 : index
    %c0_2 = arith.constant 0 : index
    %8 = vector.load %arg5[%c0_1, %c0_2] : memref<8x72xf32, #tpu.memory_space<vmem>>, vector<8x72xf32>
    %c0_3 = arith.constant 0 : index
    %c0_4 = arith.constant 0 : index
    %9 = vector.load %arg8[%c0_3, %c0_4] : memref<8x4xf32, #tpu.memory_space<vmem>>, vector<8x4xf32>
    %c0_5 = arith.constant 0 : index
    %c0_6 = arith.constant 0 : index
    %10 = vector.load %arg3[%c0_5, %c0_6] : memref<8x1xf32, #tpu.memory_space<vmem>>, vector<8x1xf32>
    %c0_7 = arith.constant 0 : index
    %c0_8 = arith.constant 0 : index
    %11 = vector.load %arg4[%c0_7, %c0_8] : memref<8x1xf32, #tpu.memory_space<vmem>>, vector<8x1xf32>
    %c0_9 = arith.constant 0 : index
    %c0_10 = arith.constant 0 : index
    %12 = vector.load %arg6[%c0_9, %c0_10] : memref<8x1xf32, #tpu.memory_space<vmem>>, vector<8x1xf32>
    %c0_11 = arith.constant 0 : index
    %c0_12 = arith.constant 0 : index
    %13 = vector.load %arg7[%c0_11, %c0_12] : memref<8x1xf32, #tpu.memory_space<vmem>>, vector<8x1xf32>
    %c0_13 = arith.constant 0 : index
    %c0_14 = arith.constant 0 : index
    %14 = vector.load %arg9[%c0_13, %c0_14] : memref<8x1xf32, #tpu.memory_space<vmem>>, vector<8x1xf32>
    %c0_15 = arith.constant 0 : index
    %c0_16 = arith.constant 0 : index
    %c0_17 = arith.constant 0 : index
    %15 = vector.load %arg1[%c0_15, %c0_16, %c0_17] : memref<1x4x256xf32, #tpu.memory_space<vmem>>, vector<1x4x256xf32>
    %16 = vector.shape_cast %15 : vector<1x4x256xf32> to vector<4x256xf32>
    %cst = arith.constant 0.000000e+00 : f32
    %17 = vector.broadcast %cst : f32 to vector<4x128xf32>
    %18 = tpu.concatenate %17, %16, %17 in 1 : vector<4x128xf32>, vector<4x256xf32>, vector<4x128xf32> -> vector<4x512xf32>
    %19 = vector.extract_strided_slice %18 {offsets = [0, 111], sizes = [4, 256], strides = [1, 1]} : vector<4x512xf32> to vector<4x256xf32>
    %cst_18 = arith.constant 0.000000e+00 : f32
    %20 = vector.shape_cast %4 : vector<1x256xi1> to vector<1x256xi1>
    %21 = vector.broadcast %20 : vector<1x256xi1> to vector<4x256xi1>
    %22 = vector.broadcast %cst_18 : f32 to vector<4x256xf32>
    %23 = arith.select %21, %19, %22 : vector<4x256xi1>, vector<4x256xf32>
    %24 = vector.extract_strided_slice %18 {offsets = [0, 112], sizes = [4, 256], strides = [1, 1]} : vector<4x512xf32> to vector<4x256xf32>
    %25 = vector.extract_strided_slice %18 {offsets = [0, 113], sizes = [4, 256], strides = [1, 1]} : vector<4x512xf32> to vector<4x256xf32>
    %cst_19 = arith.constant 0.000000e+00 : f32
    %26 = vector.shape_cast %6 : vector<1x256xi1> to vector<1x256xi1>
    %27 = vector.broadcast %26 : vector<1x256xi1> to vector<4x256xi1>
    %28 = vector.broadcast %cst_19 : f32 to vector<4x256xf32>
    %29 = arith.select %27, %25, %28 : vector<4x256xi1>, vector<4x256xf32>
    %30 = vector.extract_strided_slice %18 {offsets = [0, 127], sizes = [4, 256], strides = [1, 1]} : vector<4x512xf32> to vector<4x256xf32>
    %cst_20 = arith.constant 0.000000e+00 : f32
    %31 = vector.shape_cast %4 : vector<1x256xi1> to vector<1x256xi1>
    %32 = vector.broadcast %31 : vector<1x256xi1> to vector<4x256xi1>
    %33 = vector.broadcast %cst_20 : f32 to vector<4x256xf32>
    %34 = arith.select %32, %30, %33 : vector<4x256xi1>, vector<4x256xf32>
    %35 = vector.extract_strided_slice %18 {offsets = [0, 128], sizes = [4, 256], strides = [1, 1]} : vector<4x512xf32> to vector<4x256xf32>
    %36 = vector.extract_strided_slice %18 {offsets = [0, 129], sizes = [4, 256], strides = [1, 1]} : vector<4x512xf32> to vector<4x256xf32>
    %cst_21 = arith.constant 0.000000e+00 : f32
    %37 = vector.shape_cast %6 : vector<1x256xi1> to vector<1x256xi1>
    %38 = vector.broadcast %37 : vector<1x256xi1> to vector<4x256xi1>
    %39 = vector.broadcast %cst_21 : f32 to vector<4x256xf32>
    %40 = arith.select %38, %36, %39 : vector<4x256xi1>, vector<4x256xf32>
    %41 = vector.extract_strided_slice %18 {offsets = [0, 143], sizes = [4, 256], strides = [1, 1]} : vector<4x512xf32> to vector<4x256xf32>
    %cst_22 = arith.constant 0.000000e+00 : f32
    %42 = vector.shape_cast %4 : vector<1x256xi1> to vector<1x256xi1>
    %43 = vector.broadcast %42 : vector<1x256xi1> to vector<4x256xi1>
    %44 = vector.broadcast %cst_22 : f32 to vector<4x256xf32>
    %45 = arith.select %43, %41, %44 : vector<4x256xi1>, vector<4x256xf32>
    %46 = vector.extract_strided_slice %18 {offsets = [0, 144], sizes = [4, 256], strides = [1, 1]} : vector<4x512xf32> to vector<4x256xf32>
    %47 = vector.extract_strided_slice %18 {offsets = [0, 145], sizes = [4, 256], strides = [1, 1]} : vector<4x512xf32> to vector<4x256xf32>
    %cst_23 = arith.constant 0.000000e+00 : f32
    %48 = vector.shape_cast %6 : vector<1x256xi1> to vector<1x256xi1>
    %49 = vector.broadcast %48 : vector<1x256xi1> to vector<4x256xi1>
    %50 = vector.broadcast %cst_23 : f32 to vector<4x256xf32>
    %51 = arith.select %49, %47, %50 : vector<4x256xi1>, vector<4x256xf32>
    %52 = tpu.concatenate %23, %24, %29, %34, %35, %40, %45, %46, %51 in 0 : vector<4x256xf32>, vector<4x256xf32>, vector<4x256xf32>, vector<4x256xf32>, vector<4x256xf32>, vector<4x256xf32>, vector<4x256xf32>, vector<4x256xf32>, vector<4x256xf32> -> vector<36x256xf32>
    %cst_24 = arith.constant dense<0.000000e+00> : vector<8x256xf32>
    %53 = tpu.matmul %7, %52, %cst_24 {dimension_numbers = #tpu.dot_dimension_numbers<[1], [0], [0], [1], [0, 0, 1, 1], [], []>} : vector<8x36xf32>, vector<36x256xf32>, vector<8x256xf32> -> vector<8x256xf32>
    %54 = vector.broadcast %10 : vector<8x1xf32> to vector<8x256xf32>
    %55 = arith.mulf %53, %54 : vector<8x256xf32>
    %56 = vector.broadcast %11 : vector<8x1xf32> to vector<8x256xf32>
    %57 = arith.addf %55, %56 : vector<8x256xf32>
    %cst_25 = arith.constant 0.000000e+00 : f32
    %58 = vector.broadcast %cst_25 : f32 to vector<8x256xf32>
    %59 = arith.cmpf ogt, %57, %58 : vector<8x256xf32>
    %cst_26 = arith.constant 2.000000e-01 : f32
    %60 = vector.broadcast %cst_26 : f32 to vector<8x256xf32>
    %61 = arith.mulf %60, %57 : vector<8x256xf32>
    %62 = arith.select %59, %57, %61 : vector<8x256xi1>, vector<8x256xf32>
    %cst_27 = arith.constant 0.000000e+00 : f32
    %63 = vector.broadcast %cst_27 : f32 to vector<8x128xf32>
    %64 = tpu.concatenate %63, %62, %63 in 1 : vector<8x128xf32>, vector<8x256xf32>, vector<8x128xf32> -> vector<8x512xf32>
    %65 = vector.extract_strided_slice %64 {offsets = [0, 111], sizes = [8, 256], strides = [1, 1]} : vector<8x512xf32> to vector<8x256xf32>
    %cst_28 = arith.constant 0.000000e+00 : f32
    %66 = vector.shape_cast %4 : vector<1x256xi1> to vector<1x256xi1>
    %67 = vector.broadcast %66 : vector<1x256xi1> to vector<8x256xi1>
    %68 = vector.broadcast %cst_28 : f32 to vector<8x256xf32>
    %69 = arith.select %67, %65, %68 : vector<8x256xi1>, vector<8x256xf32>
    %70 = vector.extract_strided_slice %64 {offsets = [0, 112], sizes = [8, 256], strides = [1, 1]} : vector<8x512xf32> to vector<8x256xf32>
    %71 = vector.extract_strided_slice %64 {offsets = [0, 113], sizes = [8, 256], strides = [1, 1]} : vector<8x512xf32> to vector<8x256xf32>
    %cst_29 = arith.constant 0.000000e+00 : f32
    %72 = vector.shape_cast %6 : vector<1x256xi1> to vector<1x256xi1>
    %73 = vector.broadcast %72 : vector<1x256xi1> to vector<8x256xi1>
    %74 = vector.broadcast %cst_29 : f32 to vector<8x256xf32>
    %75 = arith.select %73, %71, %74 : vector<8x256xi1>, vector<8x256xf32>
    %76 = vector.extract_strided_slice %64 {offsets = [0, 127], sizes = [8, 256], strides = [1, 1]} : vector<8x512xf32> to vector<8x256xf32>
    %cst_30 = arith.constant 0.000000e+00 : f32
    %77 = vector.shape_cast %4 : vector<1x256xi1> to vector<1x256xi1>
    %78 = vector.broadcast %77 : vector<1x256xi1> to vector<8x256xi1>
    %79 = vector.broadcast %cst_30 : f32 to vector<8x256xf32>
    %80 = arith.select %78, %76, %79 : vector<8x256xi1>, vector<8x256xf32>
    %81 = vector.extract_strided_slice %64 {offsets = [0, 128], sizes = [8, 256], strides = [1, 1]} : vector<8x512xf32> to vector<8x256xf32>
    %82 = vector.extract_strided_slice %64 {offsets = [0, 129], sizes = [8, 256], strides = [1, 1]} : vector<8x512xf32> to vector<8x256xf32>
    %cst_31 = arith.constant 0.000000e+00 : f32
    %83 = vector.shape_cast %6 : vector<1x256xi1> to vector<1x256xi1>
    %84 = vector.broadcast %83 : vector<1x256xi1> to vector<8x256xi1>
    %85 = vector.broadcast %cst_31 : f32 to vector<8x256xf32>
    %86 = arith.select %84, %82, %85 : vector<8x256xi1>, vector<8x256xf32>
    %87 = vector.extract_strided_slice %64 {offsets = [0, 143], sizes = [8, 256], strides = [1, 1]} : vector<8x512xf32> to vector<8x256xf32>
    %cst_32 = arith.constant 0.000000e+00 : f32
    %88 = vector.shape_cast %4 : vector<1x256xi1> to vector<1x256xi1>
    %89 = vector.broadcast %88 : vector<1x256xi1> to vector<8x256xi1>
    %90 = vector.broadcast %cst_32 : f32 to vector<8x256xf32>
    %91 = arith.select %89, %87, %90 : vector<8x256xi1>, vector<8x256xf32>
    %92 = vector.extract_strided_slice %64 {offsets = [0, 144], sizes = [8, 256], strides = [1, 1]} : vector<8x512xf32> to vector<8x256xf32>
    %93 = vector.extract_strided_slice %64 {offsets = [0, 145], sizes = [8, 256], strides = [1, 1]} : vector<8x512xf32> to vector<8x256xf32>
    %cst_33 = arith.constant 0.000000e+00 : f32
    %94 = vector.shape_cast %6 : vector<1x256xi1> to vector<1x256xi1>
    %95 = vector.broadcast %94 : vector<1x256xi1> to vector<8x256xi1>
    %96 = vector.broadcast %cst_33 : f32 to vector<8x256xf32>
    %97 = arith.select %95, %93, %96 : vector<8x256xi1>, vector<8x256xf32>
    %98 = tpu.concatenate %69, %70, %75, %80, %81, %86, %91, %92, %97 in 0 : vector<8x256xf32>, vector<8x256xf32>, vector<8x256xf32>, vector<8x256xf32>, vector<8x256xf32>, vector<8x256xf32>, vector<8x256xf32>, vector<8x256xf32>, vector<8x256xf32> -> vector<72x256xf32>
    %cst_34 = arith.constant dense<0.000000e+00> : vector<8x256xf32>
    %99 = tpu.matmul %8, %98, %cst_34 {dimension_numbers = #tpu.dot_dimension_numbers<[1], [0], [0], [1], [0, 0, 1, 1], [], []>} : vector<8x72xf32>, vector<72x256xf32>, vector<8x256xf32> -> vector<8x256xf32>
    %100 = vector.broadcast %12 : vector<8x1xf32> to vector<8x256xf32>
    %101 = arith.mulf %99, %100 : vector<8x256xf32>
    %102 = vector.broadcast %13 : vector<8x1xf32> to vector<8x256xf32>
    %103 = arith.addf %101, %102 : vector<8x256xf32>
    %cst_35 = arith.constant 0.000000e+00 : f32
    %104 = vector.broadcast %cst_35 : f32 to vector<8x256xf32>
    %105 = arith.cmpf ogt, %103, %104 : vector<8x256xf32>
    %cst_36 = arith.constant 2.000000e-01 : f32
    %106 = vector.broadcast %cst_36 : f32 to vector<8x256xf32>
    %107 = arith.mulf %106, %103 : vector<8x256xf32>
    %108 = arith.select %105, %103, %107 : vector<8x256xi1>, vector<8x256xf32>
    %cst_37 = arith.constant dense<0.000000e+00> : vector<8x256xf32>
    %109 = tpu.matmul %9, %16, %cst_37 {dimension_numbers = #tpu.dot_dimension_numbers<[1], [0], [0], [1], [0, 0, 1, 1], [], []>} : vector<8x4xf32>, vector<4x256xf32>, vector<8x256xf32> -> vector<8x256xf32>
    %110 = vector.broadcast %14 : vector<8x1xf32> to vector<8x256xf32>
    %111 = arith.addf %109, %110 : vector<8x256xf32>
    %112 = arith.addf %108, %111 : vector<8x256xf32>
    %c0_38 = arith.constant 0 : index
    %c0_39 = arith.constant 0 : index
    %c0_40 = arith.constant 0 : index
    %113 = vector.load %arg10[%c0_38, %c0_39, %c0_40] : memref<1x8x256xf32, #tpu.memory_space<vmem>>, vector<1x8x256xf32>
    %114 = vector.shape_cast %113 : vector<1x8x256xf32> to vector<8x256xf32>
    %115 = vector.shape_cast %112 : vector<8x256xf32> to vector<1x8x256xf32>
    tpu.vector_store %arg10[%c0_38, %c0_39, %c0_40], %115 {strides = array<i32>} : memref<1x8x256xf32, #tpu.memory_space<vmem>>, vector<1x8x256xf32>,
    return
  }
  func.func @transform_0(%arg0: i32) -> (i32, i32, i32) {
    %c0_i32 = arith.constant 0 : i32
    %c0_i32_0 = arith.constant 0 : i32
    %c0_i32_1 = arith.constant 0 : i32
    return %arg0, %c0_i32, %c0_i32_0 : i32, i32, i32
  }
  func.func @transform_1(%arg0: i32) -> (i32, i32) {
    %c0_i32 = arith.constant 0 : i32
    %c0_i32_0 = arith.constant 0 : i32
    %c0_i32_1 = arith.constant 0 : i32
    return %c0_i32, %c0_i32_0 : i32, i32
  }
  func.func @transform_2(%arg0: i32) -> (i32, i32) {
    %c0_i32 = arith.constant 0 : i32
    %c0_i32_0 = arith.constant 0 : i32
    %c0_i32_1 = arith.constant 0 : i32
    return %c0_i32, %c0_i32_0 : i32, i32
  }
  func.func @transform_3(%arg0: i32) -> (i32, i32) {
    %c0_i32 = arith.constant 0 : i32
    %c0_i32_0 = arith.constant 0 : i32
    %c0_i32_1 = arith.constant 0 : i32
    return %c0_i32, %c0_i32_0 : i32, i32
  }
  func.func @transform_4(%arg0: i32) -> (i32, i32) {
    %c0_i32 = arith.constant 0 : i32
    %c0_i32_0 = arith.constant 0 : i32
    %c0_i32_1 = arith.constant 0 : i32
    return %c0_i32, %c0_i32_0 : i32, i32
  }
  func.func @transform_5(%arg0: i32) -> (i32, i32) {
    %c0_i32 = arith.constant 0 : i32
    %c0_i32_0 = arith.constant 0 : i32
    %c0_i32_1 = arith.constant 0 : i32
    return %c0_i32, %c0_i32_0 : i32, i32
  }
  func.func @transform_6(%arg0: i32) -> (i32, i32) {
    %c0_i32 = arith.constant 0 : i32
    %c0_i32_0 = arith.constant 0 : i32
    %c0_i32_1 = arith.constant 0 : i32
    return %c0_i32, %c0_i32_0 : i32, i32
  }
  func.func @transform_7(%arg0: i32) -> (i32, i32) {
    %c0_i32 = arith.constant 0 : i32
    %c0_i32_0 = arith.constant 0 : i32
    %c0_i32_1 = arith.constant 0 : i32
    return %c0_i32, %c0_i32_0 : i32, i32
  }
  func.func @transform_8(%arg0: i32) -> (i32, i32) {
    %c0_i32 = arith.constant 0 : i32
    %c0_i32_0 = arith.constant 0 : i32
    %c0_i32_1 = arith.constant 0 : i32
    return %c0_i32, %c0_i32_0 : i32, i32
  }
  func.func @transform_9(%arg0: i32) -> (i32, i32, i32) {
    %c0_i32 = arith.constant 0 : i32
    %c0_i32_0 = arith.constant 0 : i32
    %c0_i32_1 = arith.constant 0 : i32
    return %arg0, %c0_i32, %c0_i32_0 : i32, i32, i32
  }
}

</mosaic_0001>

<bundles_post_ra>
// kernel: convblock_pallas.1
= control target key start
LH: loop header
LB: loop body
LE: loop exit
PB: predicated region body
PF: predicated region fallthrough
CT: control target
= control target key end

     0   :  { %s1133_s30 = smov 0   ;;  %s1413_s0 = inlined_call_operand.vmem [shape: f32[2,4,256], index: 0, kind: input, shape index: {}]   ;;  %s1414_s1 = inlined_call_operand.vmem [shape: f32[8,36], index: 1, kind: input, shape index: {}]   ;;  %s1415_s2 = inlined_call_operand.vmem [shape: f32[8,1], index: 2, kind: input, shape index: {}]   ;;  %s1416_s3 = inlined_call_operand.vmem [shape: f32[8,1], index: 3, kind: input, shape index: {}]   ;;  %s1417_s4 = inlined_call_operand.vmem [shape: f32[8,72], index: 4, kind: input, shape index: {}]   ;;  %s1418_s5 = inlined_call_operand.vmem [shape: f32[8,1], index: 5, kind: input, shape index: {}]   ;;  %s1419_s6 = inlined_call_operand.vmem [shape: f32[8,1], index: 6, kind: input, shape index: {}]   ;;  %s1420_s7 = inlined_call_operand.vmem [shape: f32[8,4], index: 7, kind: input, shape index: {}]   ;;  %s1421_s8 = inlined_call_operand.vmem [shape: f32[8,1], index: 8, kind: input, shape index: {}]   ;;  %s1422_s9 = inlined_call_operand.vmem [shape: f32[2,8,256], index: 9, kind: output, shape index: {}]  }
   0x1 LB: > { %s908_s10 = sadd.s32 4294967295, %s1070_s30   ;;  %p912_p0 = scmp.ge.s32.totalorder %s1070_s30, 1  ;;  %s1070_s30 = sphi %s1133_s30, %s19_s30  }
   0x2   : > { %p287_p1 = scmp.lt.s32.totalorder %s1070_s30, 3 }
   0x4   : > { %p288_p2 = pnand %p912_p0, %p287_p1 }
   0x5   : > { %v1072_v0 = vmov (!%p288_p2), 0.0   ;;  %s1073_s11 = smov (!%p288_p2), 1   ;;  %s1074_s12 = smov (!%p288_p2), 15   ;;  %v1080_v9 = vmov (!%p288_p2), 0   ;;  %v345_v10 = vld [vmem:[%s1415_s2] sm:$0xff] (!%p288_p2)  ;;  %v333_v12 = vlaneseq (!%p288_p2)  ;;  %vm395_vm0 = vcmask (!%p288_p2), 7168  }
   0x6   : > { %291 = sbr.rel (%p288_p2) target bundleno = 752 (0x2f0), region = 56  ;;  %389 = vrot.lane.b32.xlu0 (!%p288_p2), %v1072_v0, %s1073_s11  ;;  %376 = vrot.lane.b32.xlu1 (!%p288_p2), %v1072_v0, %s1074_s12  ;;  %p323_p3 = scmp.lt.s32.totalorder (!%p288_p2), %s908_s10, 1  ;;  %v441_v7 = vrot.slane (!%p288_p2), %v1072_v0, 4  ;;  %v346_v11 = vld [vmem:[%s1416_s3] sm:$0xff] (!%p288_p2)  ;;  %vm365_vm2 = vcmask (!%p288_p2), 138240   ;;  %vm450_vm4 = vcmask (!%p288_p2), 130048  }
   0x7   : > { %561 = vmatprep.mubr.f32.mxu0 (!%p288_p2), %v1072_v0  ;;  %738 = vmatprep.mubr.f32.mxu1 (!%p288_p2), %v1072_v0  ;;  %s1075_s13 = smov (!%p288_p2), 17   ;;  %s1076_s18 = smov (!%p288_p2), 16   ;;  %v334_v13 = vand.u32 (!%p288_p2), 127, %v333_v12  ;;  %vm382_vm5 = vcmask (!%p288_p2), 121856   ;;  %vm478_vm6 = vcmask (!%p288_p2), 1043456   ;;  %vm408_vm9 = vcmask (!%p288_p2), 1039360  }
   0x8   : > { %s1077_s19 = smov (!%p288_p2), 127   ;;  %s1078_s20 = smov (!%p288_p2), 113   ;;  %1026 = vset.pattern.permute.xlu1 (!%p288_p2), %v1080_v9  ;;  %1027 = vset.pattern.permute.xlu0 (!%p288_p2), %v1080_v9  ;;  %vm421_vm10 = vcmask (!%p288_p2), 924672   ;;  %vm473_vm11 = vcmask (!%p288_p2), 916480   ;;  %vm434_vm12 = vcmask (!%p288_p2), 908288   ;;  %vm487_vm13 = vcmask (!%p288_p2), 293888  }
   0x9   : > { %s1079_s21 = smov (!%p288_p2), 112   ;;  %s1081_s22 = smov (!%p288_p2), 111   ;;  %v335_v15 = vadd.s32 (!%p288_p2), 128, %v334_v13  ;;  %v336_v18 = vand.u32 (!%p288_p2), 15, %v334_v13  ;;  %vm770_vm14 = vcmask (!%p288_p2), 31744  }
   0xa   : > { %359 = vrot.lane.b32.xlu0 (!%p288_p2), %v1072_v0, %s1075_s13 }
   0xb   : > { %v337_v19 = vand.u32 (!%p288_p2), 15, %v335_v15  ;;  %vm1206_vm3 = vcmp.ge.s32.totalorder (!%p288_p2), %v336_v18, 1  ;;  %vm1213_vm7 = vcmp.le.s32.totalorder (!%p288_p2), %v336_v18, 14 }
   0xd   : > { %s1436_s10 = smov (!%p323_p3, %s908_s10), 1  ;;  %vm1202_vm1 = vcmp.ge.s32.totalorder %v337_v19, 1  ;;  %vm1218_vm8 = vcmp.le.s32.totalorder %v337_v19, 14 }
   0xe   : > { %s938_s14 = sshll.u32 %s1436_s10, 3 }
   0xf   : > { %s327_s17 = scalar_lea.vmem %s1413_s0, %s938_s14 }
  0x10   : > { %v1155_v1 = vld [vmem:[%s327_s17] sm:$0xff] }
  0x11   : > { %v1159_v2 = vcombine.high %v1155_v1, %v1155_v1  ;;  %v442_v3 = vrot.slane %v1155_v1, 4 }
  0x13   : > { %v996_v4 = vpack.i.bf16 %v1159_v2, %v1155_v1  ;;  %v1006_v5 = vpack.i.bf16 %v1159_v2, %v442_v3  ;;  %v1011_v6 = vpack.i.bf16 %v1072_v0, %v1159_v2  ;;  %v1021_v8 = vpack.i.bf16 %v441_v7, %v1159_v2 }
  0x15   : > { %997 = vrot.lane.b32.xlu1 %v996_v4, %s1075_s13  ;;  %992 = vrot.lane.b32.xlu0 %v996_v4, %s1073_s11 }
  0x19   : > { %1002 = vrot.lane.b32.xlu1 %v996_v4, %s1074_s12  ;;  %1007 = vrot.lane.b32.xlu0 %v1006_v5, %s1076_s18 }
  0x1d   : > { %1012 = vrot.lane.b32.xlu1 %v1011_v6, %s1077_s19  ;;  %444 = vrot.lane.b32.xlu0 %v441_v7, %s1076_s18 }
  0x21   : > { %402 = vrot.lane.b32.xlu1 %v1155_v1, %s1077_s19  ;;  %1017 = vrot.lane.b32.xlu0 %v1011_v6, %s1078_s20 }
  0x25   : > { %415 = vrot.lane.b32.xlu1 %v1155_v1, %s1078_s20  ;;  %1022 = vrot.lane.b32.xlu0 %v1021_v8, %s1079_s21 }
  0x29   : > { %467 = vrot.lane.b32.xlu1 %v442_v3, %s1079_s21  ;;  %430 = vrot.lane.b32.xlu0 %v1159_v2, %s1081_s22 }
  0x2d   : > { %432 = vrot.lane.b32.xlu1 %v1072_v0, %s1081_s22  ;;  %428 = vrot.lane.b32.xlu0 %v1155_v1, %s1081_s22 }
  0x31   : > { %570 = vperm.xlu1 %1026, %v345_v10   ;;  %577 = vperm.xlu0 %1027, %v346_v11  }
  0x35   : > { %650 = vrot.lane.b32.xlu0 %v1072_v0, %s1076_s18 }
  0x78   : > { %v1196_v14 = vpop.permute.xlu0 %389  ;;  %v1198_v16 = vpop.permute.xlu1 %376 }
  0x7c   : > { %v1200_v17 = vpop.permute.xlu0 %359 }
  0x87   : > { %v998_v20 = vpop.permute.xlu1 %997  ;;  %v993_v21 = vpop.permute.xlu0 %992 }
  0x88   : > { %v1000_v24 = vunpack.i.h.bf16 %v998_v20  ;;  %v999_v25 = vunpack.i.l.bf16 %v998_v20  ;;  %v995_v26 = vunpack.i.h.bf16 %v993_v21  ;;  %v994_v27 = vunpack.i.l.bf16 %v993_v21 }
  0x8a   : > { %v396_v28 = vsel %vm395_vm0, %v1196_v14, %v994_v27  ;;  %v397_v29 = vsel %vm395_vm0, %v994_v27, %v995_v26  ;;  %v367_v31 = vsel %vm365_vm2, %v999_v25, %v1000_v24  ;;  %v366_v36 = vsel %vm365_vm2, %v1200_v17, %v999_v25 }
  0x8b   : > { %v1003_v32 = vpop.permute.xlu1 %1002  ;;  %v1008_v33 = vpop.permute.xlu0 %1007  ;;  %v401_v35 = vsel %vm1202_vm1, %v397_v29, 0.0  ;;  %v400_v37 = vsel %vm1206_vm3, %v396_v28, 0.0  ;;  %v371_v42 = vsel %vm1202_vm1, %v367_v31, 0.0  ;;  %v370_v46 = vsel %vm1206_vm3, %v366_v36, 0.0 }
  0x8c   : > { %v1005_v38 = vunpack.i.h.bf16 %v1003_v32  ;;  %v1004_v39 = vunpack.i.l.bf16 %v1003_v32  ;;  %v1010_v40 = vunpack.i.h.bf16 %v1008_v33  ;;  %v1009_v41 = vunpack.i.l.bf16 %v1008_v33 }
  0x8d   : > { %v458_v43 = vrot.slane %v401_v35, 4  ;;  %v457_v53 = vrot.slane %v400_v37, 4 }
  0x8e   : > { %v384_v44 = vsel %vm382_vm5, %v1004_v39, %v1005_v38  ;;  %v452_v45 = vsel %vm450_vm4, %v1009_v41, %v1010_v40  ;;  %v383_v47 = vsel %vm382_vm5, %v1198_v16, %v1004_v39 }
  0x8f   : > { %v1236_v48 = vpop.permute.xlu1 %1012  ;;  %v445_v49 = vpop.permute.xlu0 %444  ;;  %v388_v50 = vsel %vm1218_vm8, %v384_v44, 0.0  ;;  %v480_v51 = vsel %vm478_vm6, %v371_v42, %v452_v45  ;;  %v387_v52 = vsel %vm1213_vm7, %v383_v47, 0.0 }
  0x90   : > { %v1015_v54 = vunpack.i.h.bf16 %v1236_v48  ;;  %v1014_v55 = vunpack.i.l.bf16 %v1236_v48  ;;  %v451_v56 = vsel %vm450_vm4, %v445_v49, %v1009_v41  ;;  %v482_v57 = vsel %vm478_vm6, %v388_v50, %v458_v43  ;;  %v342_v41 = vld [vmem:[%s1414_s1] sm:$0xff] }
  0x91   : > { %v940_v58 = vpack.c.bf16 %v482_v57, %v480_v51  ;;  %v479_v59 = vsel %vm478_vm6, %v370_v46, %v451_v56  ;;  %v481_v60 = vsel %vm478_vm6, %v387_v52, %v457_v53  ;;  %v344_v43 = vld [vmem:[%s1420_s7] sm:$0xff] }
  0x92   : > { %v410_v61 = vsel %vm408_vm9, %v1014_v55, %v1015_v54  ;;  %v942_v62 = vpack.c.bf16 %v481_v60, %v479_v59  ;;  %v347_v60 = vld [vmem:[%s1418_s5] sm:$0xff] }
  0x93   : > { %v403_v63 = vpop.permute.xlu1 %402  ;;  %v1252_v3 = vpop.permute.xlu0 %1017  ;;  %941 = vmatprep.subr.bf16.mxu0 %v940_v58  ;;  %v414_v7 = vsel %vm1218_vm8, %v410_v61, 0.0  ;;  %v348_v58 = vld [vmem:[%s1419_s6] sm:$0xff] }
  0x94   : > { %v409_v4 = vsel %vm408_vm9, %v403_v63, %v1014_v55  ;;  %v1020_v5 = vunpack.i.h.bf16 %v1252_v3  ;;  %v1019_v6 = vunpack.i.l.bf16 %v1252_v3  ;;  %943 = vmatpush1.bf16.msra.mxu0 %v942_v62  ;;  %v464_v12 = vrot.slane %v414_v7, 4  ;;  %v349_v63 = vld [vmem:[%s1421_s8] sm:$0xff] }
  0x95   : > { %v413_v8 = vsel %vm1213_vm7, %v409_v4, 0.0 }
  0x96   : > { %v423_v11 = vsel %vm421_vm10, %v1019_v6, %v1020_v5  ;;  %v463_v18 = vrot.slane %v413_v8, 4  ;;  %v484_v26 = vsel %vm478_vm6, %v1159_v2, %v464_v12 }
  0x97   : > { %v416_v9 = vpop.permute.xlu1 %415  ;;  %v1023_v10 = vpop.permute.xlu0 %1022  ;;  %v427_v20 = vsel %vm1202_vm1, %v423_v11, 0.0 }
  0x98   : > { %v1025_v13 = vunpack.i.h.bf16 %v1023_v10  ;;  %v1024_v15 = vunpack.i.l.bf16 %v1023_v10  ;;  %v422_v19 = vsel %vm421_vm10, %v416_v9, %v1019_v6  ;;  %v483_v33 = vsel %vm478_vm6, %v1155_v1, %v463_v18 }
  0x99   : > { %v426_v28 = vsel %vm1206_vm3, %v422_v19, 0.0 }
  0x9a   : > { %v475_v21 = vsel %vm473_vm11, %v1024_v15, %v1025_v13 }
  0x9b   : > { %v468_v24 = vpop.permute.xlu1 %467  ;;  %v431_v25 = vpop.permute.xlu0 %430  ;;  %v486_v27 = vsel %vm478_vm6, %v427_v20, %v475_v21 }
  0x9c   : > { %v474_v29 = vsel %vm473_vm11, %v468_v24, %v1024_v15  ;;  %v944_v31 = vpack.c.bf16 %v486_v27, %v484_v26 }
  0x9d   : > { %v485_v32 = vsel %vm478_vm6, %v426_v28, %v474_v29 }
  0x9e   : > { %945 = vmatprep.subr.bf16.mxu0 %v944_v31  ;;  %v946_v35 = vpack.c.bf16 %v485_v32, %v483_v33 }
  0x9f   : > { %v1277_v36 = vpop.permute.xlu1 %432  ;;  %v429_v37 = vpop.permute.xlu0 %428 }
  0xa0   : > { %v436_v38 = vsel %vm434_vm12, %v431_v25, %v1277_v36  ;;  %v435_v39 = vsel %vm434_vm12, %v429_v37, %v431_v25  ;;  %947 = vmatpush1.bf16.msra.mxu0 %v946_v35 }
  0xa1   : > { %v440_v40 = vsel %vm1218_vm8, %v436_v38, 0.0  ;;  %v439_v42 = vsel %vm1213_vm7, %v435_v39, 0.0 }
  0xa2   : > { %917 = vmatprep.subr.msk.mxu0 %vm478_vm6, %v440_v40 }
  0xa4   : > { %918 = vmatpush1.msk.msra.mxu0 %vm478_vm6, %v439_v42 }
  0xa5   : > { %919 = vmatmul.mubr.msk.f32.vlgmr.msra.gmra.mrb[0].mxu0 %vm487_vm13, %v342_v41  ;;  %933 = vmatprep.subr.msk.mxu0 %vm478_vm6, %v1159_v2 }
  0xa6   : > { %934 = vmatpush1.msk.msra.mxu0 %vm478_vm6, %v1155_v1  ;;  %842 = vmatprep.mubr.f32.mxu0 %v1072_v0  ;;  %vm1082_vm6 = vmmov 1  }
  0xa9   : > { %935 = vmatmul.mubr.msk.f32.vlgmr.msra.gmra.mrb[2].mxu0 %vm770_vm14, %v344_v43  ;;  %vm1340_vm14 = vmpackc.low %vm1082_vm6, %vm1202_vm1 }
  0xb0   : > { %v571_v44 = vpop.permute.xlu1 %570  ;;  %v578_v46 = vpop.permute.xlu0 %577 }
 0x178   : > { %v563_v45 = vpop.f32.mrb[0].mxu0 }
 0x179   : > { %v573_v47 = vmul.f32 %v571_v44, %v563_v45  ;;  %v565_v49 = vpop.f32.mrb[1].mxu0 }
 0x17a   : > { %v574_v50 = vmul.f32 %v571_v44, %v565_v49 }
 0x17b   : > { %v580_v51 = vadd.f32 %v578_v46, %v573_v47 }
 0x17c   : > { %v581_v52 = vadd.f32 %v578_v46, %v574_v50  ;;  %v1328_v61 = vpop.f32.mrb[2].mxu0 }
 0x17d   : > { %vm582_vm15 = vcmp.gt.f32.partialorder %v580_v51, 0.0  ;;  %v584_v2 = vmul.f32 0.2, %v580_v51  ;;  %v1330_v62 = vpop.f32.mrb[3].mxu0 }
 0x17e   : > { %vm583_vm13 = vcmp.gt.f32.partialorder %v581_v52, 0.0  ;;  %v585_v1 = vmul.f32 0.2, %v581_v52 }
 0x17f   : > { %v1299_v53 = vsel %vm582_vm15, %v580_v51, %v584_v2  ;;  %vm1350_vm15 = vmpackc.low %vm1082_vm6, %vm1206_vm3 }
 0x180   : > { %v1301_v55 = vsel %vm583_vm13, %v581_v52, %v585_v1 }
 0x181   : > { %v1043_v56 = vpack.i.bf16 %v1301_v55, %v1299_v53  ;;  %v1053_v57 = vpack.i.bf16 %v1299_v53, %v1301_v55  ;;  %v1058_v59 = vpack.i.bf16 %v1072_v0, %v1301_v55  ;;  %v651_v0 = vpop.permute.xlu0 %650 }
 0x183   : > { %1044 = vrot.lane.b32.xlu0 %v1043_v56, %s1073_s11  ;;  %1029 = vrot.lane.b32.xlu1 %v1043_v56, %s1075_s13 }
 0x187   : > { %1054 = vrot.lane.b32.xlu0 %v1053_v57, %s1078_s20  ;;  %1034 = vrot.lane.b32.xlu1 %v1043_v56, %s1076_s18  ;;  %s939_s20 = sshll.u32 %s1436_s10, 4 }
 0x188   : > { %s332_s23 = scalar_lea.vmem %s1422_s9, %s939_s20 }
 0x18b   : > { %660 = vrot.lane.b32.xlu0 %v1299_v53, %s1079_s21  ;;  %1039 = vrot.lane.b32.xlu1 %v1043_v56, %s1074_s12 }
 0x18f   : > { %640 = vrot.lane.b32.xlu0 %v1299_v53, %s1081_s22  ;;  %1049 = vrot.lane.b32.xlu1 %v1053_v57, %s1077_s19 }
 0x193   : > { %754 = vperm.xlu0 %1027, %v348_v58   ;;  %1059 = vrot.lane.b32.xlu1 %v1058_v59, %s1079_s21 }
 0x197   : > { %642 = vrot.lane.b32.xlu1 %v1301_v55, %s1081_s22 }
 0x19b   : > { %747 = vperm.xlu1 %1026, %v347_v60  }
 0x19f   : > { %767 = vperm.xlu1 %1026, %v349_v63  }
 0x1f5   : > { %v1030_v4 = vpop.permute.xlu1 %1029  ;;  %v1045_v6 = vpop.permute.xlu0 %1044 }
 0x1f6   : > { %v1032_v7 = vunpack.i.h.bf16 %v1030_v4  ;;  %v1031_v8 = vunpack.i.l.bf16 %v1030_v4  ;;  %v1047_v12 = vunpack.i.h.bf16 %v1045_v6  ;;  %v1046_v13 = vunpack.i.l.bf16 %v1045_v6 }
 0x1f8   : > { %v595_v15 = vsel %vm365_vm2, %v1031_v8, %v1032_v7  ;;  %v594_v20 = vsel %vm365_vm2, %v1200_v17, %v1031_v8  ;;  %v614_v17 = vsel %vm395_vm0, %v1196_v14, %v1046_v13  ;;  %v615_v31 = vsel %vm395_vm0, %v1046_v13, %v1047_v12  ;;  %vm955_vm2 = vmpackc.low %vm1202_vm1, %vm1218_vm8 }
 0x1f9   : > { %v1035_v9 = vpop.permute.xlu1 %1034  ;;  %v1055_v35 = vpop.permute.xlu0 %1054  ;;  %vm958_vm0 = vmpackc.low %vm1206_vm3, %vm1213_vm7 }
 0x1fa   : > { %v1037_v10 = vunpack.i.h.bf16 %v1035_v9  ;;  %v1036_v11 = vunpack.i.l.bf16 %v1035_v9  ;;  %v1057_v40 = vunpack.i.h.bf16 %v1055_v35  ;;  %v1056_v41 = vunpack.i.l.bf16 %v1055_v35  ;;  %vm961_vm1 = vmpackc.low %vm1218_vm8, %vm1082_vm6 }
 0x1fb   : > { %vm964_vm3 = vmpackc.low %vm1213_vm7, %vm1082_vm6 }
 0x1fc   : > { %v657_v18 = vsel %vm450_vm4, %v1036_v11, %v1037_v10  ;;  %v656_v21 = vsel %vm450_vm4, %v651_v0, %v1036_v11  ;;  %v634_v48 = vsel %vm421_vm10, %v1057_v40, %v1056_v41  ;;  %vm670_vm4 = vcmask 588800  }
 0x1fd   : > { %v1040_v24 = vpop.permute.xlu1 %1039  ;;  %v948_v25 = vpack.c.bf16 %v657_v18, %v595_v15  ;;  %v951_v26 = vpack.c.bf16 %v656_v21, %v594_v20  ;;  %v661_v47 = vpop.permute.xlu0 %660 }
 0x1fe   : > { %v1042_v28 = vunpack.i.h.bf16 %v1040_v24  ;;  %v1041_v29 = vunpack.i.l.bf16 %v1040_v24 }
 0x1ff   : > { %950 = vmatprep.subr.msk.bf16.mxu1 %vm1340_vm14, %v948_v25 }
 0x200   : > { %v604_v32 = vsel %vm382_vm5, %v1198_v16, %v1041_v29  ;;  %v605_v33 = vsel %vm382_vm5, %v1041_v29, %v1042_v28  ;;  %953 = vmatpush1.bf16.msk.msra.mxu1 %vm1350_vm15, %v951_v26 }
 0x201   : > { %v954_v37 = vpack.c.bf16 %v615_v31, %v605_v33  ;;  %v957_v38 = vpack.c.bf16 %v614_v17, %v604_v32  ;;  %v1050_v39 = vpop.permute.xlu1 %1049  ;;  %v641_v3 = vpop.permute.xlu0 %640 }
 0x202   : > { %v1052_v14 = vunpack.i.h.bf16 %v1050_v39  ;;  %v1051_v16 = vunpack.i.l.bf16 %v1050_v39 }
 0x203   : > { %956 = vmatprep.subr.msk.bf16.mxu1 %vm955_vm2, %v954_v37 }
 0x204   : > { %v624_v42 = vsel %vm408_vm9, %v1052_v14, %v1051_v16  ;;  %v625_v22 = vsel %vm408_vm9, %v1051_v16, %v1015_v54  ;;  %959 = vmatpush1.bf16.msk.msra.mxu1 %vm958_vm0, %v957_v38  ;;  %v635_v54 = vsel %vm421_vm10, %v1056_v41, %v1020_v5  ;;  %v343_v5 = vld [vmem:[%s1417_s4] sm:$0xff] }
 0x205   : > { %v960_v43 = vpack.c.bf16 %v625_v22, %v1301_v55  ;;  %v963_v23 = vpack.c.bf16 %v624_v42, %v1299_v53  ;;  %v1060_v44 = vpop.permute.xlu1 %1059 }
 0x206   : > { %v1062_v45 = vunpack.i.h.bf16 %v1060_v44  ;;  %v1061_v46 = vunpack.i.l.bf16 %v1060_v44 }
 0x207   : > { %962 = vmatprep.subr.msk.bf16.mxu1 %vm961_vm1, %v960_v43 }
 0x208   : > { %v666_v49 = vsel %vm473_vm11, %v661_v47, %v1061_v46  ;;  %v667_v50 = vsel %vm473_vm11, %v1061_v46, %v1062_v45  ;;  %965 = vmatpush1.bf16.msk.msra.mxu1 %vm964_vm3, %v963_v23 }
 0x209   : > { %v966_v51 = vpack.c.bf16 %v667_v50, %v635_v54  ;;  %v969_v52 = vpack.c.bf16 %v666_v49, %v634_v48  ;;  %v643_v2 = vpop.permute.xlu1 %642 }
 0x20a   : > { %v645_v1 = vsel %vm434_vm12, %v643_v2, %v1277_v36  ;;  %v644_v53 = vsel %vm434_vm12, %v641_v3, %v643_v2 }
 0x20b   : > { %968 = vmatprep.subr.msk.bf16.mxu1 %vm1340_vm14, %v966_v51 }
 0x20c   : > { %971 = vmatpush1.bf16.msk.msra.mxu1 %vm1350_vm15, %v969_v52 }
 0x20d   : > { %930 = vmatprep.subr.msk.mxu1 %vm1218_vm8, %v645_v1 }
 0x210   : > { %931 = vmatpush1.msk.msra.mxu1 %vm1213_vm7, %v644_v53 }
 0x211   : > { %932 = vmatmul.mubr.msk.f32.vlgmr.msra.gmra.mrb[0].mxu1 %vm670_vm4, %v343_v5 }
 0x212   : > { %v755_v58 = vpop.permute.xlu0 %754 }
 0x21a   : > { %v748_v36 = vpop.permute.xlu1 %747 }
 0x21e   : > { %v768_v59 = vpop.permute.xlu1 %767 }
 0x21f   : > { %v845_v4 = vadd.f32 %v1328_v61, %v768_v59  ;;  %v847_v30 = vadd.f32 %v1330_v62, %v768_v59 }
 0x2e4   : > { %v740_v55 = vpop.f32.mrb[0].mxu1 }
 0x2e5   : > { %v750_v56 = vmul.f32 %v748_v36, %v740_v55  ;;  %v742_v57 = vpop.f32.mrb[1].mxu1 }
 0x2e6   : > { %v751_v34 = vmul.f32 %v748_v36, %v742_v57 }
 0x2e7   : > { %v757_v60 = vadd.f32 %v755_v58, %v750_v56 }
 0x2e8   : > { %v758_v63 = vadd.f32 %v755_v58, %v751_v34 }
 0x2e9   : > { %vm759_vm5 = vcmp.gt.f32.partialorder %v757_v60, 0.0  ;;  %v761_v0 = vmul.f32 0.2, %v757_v60 }
 0x2ea   : > { %vm760_vm8 = vcmp.gt.f32.partialorder %v758_v63, 0.0  ;;  %v762_v6 = vmul.f32 0.2, %v758_v63 }
 0x2eb   : > { %v763_v7 = vsel %vm759_vm5, %v757_v60, %v761_v0 }
 0x2ec   : > { %v849_v8 = vadd.f32 %v845_v4, %v763_v7  ;;  %v764_v9 = vsel %vm760_vm8, %v758_v63, %v762_v6 }
 0x2ed   : > { %v850_v10 = vadd.f32 %v847_v30, %v764_v9 }
 0x2ee   : > { %851 = vst [vmem:[%s332_s23] sm:$0xff] %v849_v8 }
 0x2ef   : > { %852 = vst [vmem:[%s332_s23 + $0x8] sm:$0xff] %v850_v10 }
 0x2f0 PF: > { %s19_s30 = sadd.s32 1, %s1070_s30  }
 0x2f1   : > { %p16_p4 = scmp.ge.s32.totalorder %s19_s30, 4  }
 0x2f3   :  { %18 = sbr.rel (!%p16_p4) target bundleno = 1 (0x1), region = 86 }

</bundles_post_ra>
